<compile_context>
chip_gen: v5e
topology: v5e:2x2
jax: 0.10.0
libtpu: 0.0.40
codegen_flags: <defaults>
</compile_context>

<pallas_src>
import jax
import jax.numpy as jnp
from jax import lax
from jax.experimental import pallas as pl
from jax.experimental.pallas import tpu as pltpu


def _round_up(v, m):
    return (v + m - 1) // m * m


def _grouped_expert_kernel(tile_expert_ref, x_ref, w_ref, b_ref, out_ref):
    """One grid step: (token_tile, d_pad) @ (d_pad, tile_n) for this row tile's expert."""
    del tile_expert_ref  # consumed only by the BlockSpec index_maps
    h = jnp.dot(x_ref[...], w_ref[0], preferred_element_type=jnp.float32)
    out_ref[...] = (h + b_ref[0].astype(jnp.float32)).astype(out_ref.dtype)


def moe_forward(x, wg, bg, we, be, top_k, *, token_tile=256, tile_n=512):
    """x: (B,S,D). wg: (D,E), bg: (E,), we: (E,D,D), be: (E,D). Returns (B,S,D)."""
    b, s, d = x.shape
    n_exp = wg.shape[1]
    n_tok = b * s
    tm = token_tile
    x_flat = x.reshape(n_tok, d)

    # ---------------- gating + routing (XLA wrapper) ----------------
    logits = x_flat.astype(jnp.float32) @ wg.astype(jnp.float32) + bg.astype(jnp.float32)
    probs = jax.nn.softmax(logits, axis=-1)
    topk_p, topk_i = lax.top_k(probs, top_k)                         # (N, K)
    topk_p = topk_p / jnp.maximum(jnp.sum(topk_p, -1, keepdims=True), 1e-30)

    n_assign = n_tok * top_k
    a_expert = topk_i.reshape(-1).astype(jnp.int32)                  # (A,)
    a_token = jnp.repeat(jnp.arange(n_tok, dtype=jnp.int32), top_k)  # (A,)
    a_gate = topk_p.reshape(-1)                                      # (A,) f32

    order = jnp.argsort(a_expert)                                    # group by expert
    s_expert = a_expert[order]
    s_token = a_token[order]
    s_gate = a_gate[order]

    group_sizes = jnp.bincount(s_expert, length=n_exp).astype(jnp.int32)
    tiles_per_group = (group_sizes + tm - 1) // tm
    cum_tiles = jnp.cumsum(tiles_per_group)                          # inclusive
    tile_start = cum_tiles - tiles_per_group                         # exclusive
    size_start = jnp.cumsum(group_sizes) - group_sizes               # exclusive

    a_pos = jnp.arange(n_assign, dtype=jnp.int32)
    # destination row of each assignment in the tile-padded, expert-contiguous matrix
    dest = tile_start[s_expert] * tm + (a_pos - size_start[s_expert])

    # static upper bound on row tiles (each expert wastes at most one partial tile)
    max_tiles = -(-(n_assign + n_exp * (tm - 1)) // tm)
    m_pad = max_tiles * tm

    # expert id per row tile; inactive tail tiles reuse the last expert id (their rows
    # are all-zero and never gathered back), keeping the output map injective so the
    # row-tile grid axis can stay "parallel" (megacore / 2-TC sharding on v7x).
    t_idx = jnp.arange(max_tiles, dtype=jnp.int32)
    tile_expert = jnp.minimum(
        jnp.searchsorted(cum_tiles, t_idx, side="right"), n_exp - 1).astype(jnp.int32)

    # ---------------- padding / layout ----------------
    lane = 128
    d_pad = _round_up(d, lane)                                       # contraction dim
    tile_n = max(lane, (min(tile_n, d_pad) // lane) * lane)          # out-feature tile
    dcol_pad = _round_up(d, tile_n)                                  # out-feature dim

    x_pad = x_flat if d_pad == d else jnp.pad(x_flat, ((0, 0), (0, d_pad - d)))
    x_grouped = jnp.zeros((m_pad, d_pad), x.dtype).at[dest].set(x_pad[s_token])
    we_p = jnp.pad(we, ((0, 0), (0, d_pad - d), (0, dcol_pad - d)))
    be_p = jnp.pad(be, ((0, 0), (0, dcol_pad - d))).reshape(n_exp, 1, dcol_pad)

    n_col_tiles = dcol_pad // tile_n
    in_isz = jnp.dtype(x.dtype).itemsize
    w_isz = jnp.dtype(we.dtype).itemsize

    # explicit scoped-VMEM budget: double-buffered working set + headroom, clamped so
    # default tiles stay safe on every generation (v5e 16 MiB / v6e 32 / v7x 32 default)
    need = 2 * (tm * d_pad * in_isz + d_pad * tile_n * w_isz + tile_n * w_isz
                + tm * tile_n * in_isz)
    vmem_limit = int(min(max(2 * need + (8 << 20), 32 << 20), 100 << 20))

    cost = pl.CostEstimate(
        flops=2 * max_tiles * tm * d_pad * dcol_pad,
        transcendentals=0,
        bytes_accessed=(m_pad * d_pad * in_isz                    # grouped activations
                        + max_tiles * d_pad * dcol_pad * w_isz    # streamed expert weights
                        + m_pad * dcol_pad * in_isz               # grouped outputs
                        + n_exp * dcol_pad * w_isz),              # biases
    )

    y_grouped = pl.pallas_call(
        _grouped_expert_kernel,
        out_shape=jax.ShapeDtypeStruct((m_pad, dcol_pad), x.dtype),
        grid_spec=pltpu.PrefetchScalarGridSpec(
            num_scalar_prefetch=1,
            grid=(max_tiles, n_col_tiles),
            in_specs=[
                # token tile: block index constant over the col axis -> stays resident
                pl.BlockSpec((tm, d_pad), lambda t, nn, te: (t, 0)),
                # expert weight column-tile, streamed; expert picked via prefetched SMEM ids
                pl.BlockSpec((1, d_pad, tile_n), lambda t, nn, te: (te[t], 0, nn)),
                # expert bias column-tile
                pl.BlockSpec((1, 1, tile_n), lambda t, nn, te: (te[t], 0, nn)),
            ],
            out_specs=pl.BlockSpec((tm, tile_n), lambda t, nn, te: (t, nn)),
        ),
        compiler_params=pltpu.CompilerParams(
            dimension_semantics=("parallel", "arbitrary"),
            vmem_limit_bytes=vmem_limit),
        cost_estimate=cost,
    )(tile_expert, x_grouped, we_p, be_p)

    # ---------------- combine (XLA): gate-scale + scatter-add back to tokens ----------
    y_a = y_grouped[dest][:, :d].astype(jnp.float32)                 # (A, d)
    out = jnp.zeros((n_tok, d), jnp.float32).at[s_token].add(s_gate[:, None] * y_a)
    return out.reshape(b, s, d).astype(x.dtype)


def moe_reference(x, wg, bg, we, be, top_k):
    """Pure-JAX reference mirroring the PyTorch forward semantics."""
    xf = x.astype(jnp.float32)
    logits = jnp.einsum("bsd,de->bse", xf, wg.astype(jnp.float32)) + bg.astype(jnp.float32)
    probs = jax.nn.softmax(logits, axis=-1)
    topk_probs, topk_idx = lax.top_k(probs, top_k)
    topk_probs = topk_probs / jnp.sum(topk_probs, axis=-1, keepdims=True)
    out = jnp.zeros(x.shape, jnp.float32)
    num_experts = wg.shape[1]
    for i in range(num_experts):
        h = jnp.einsum("bsd,df->bsf", xf, we[i].astype(jnp.float32)) + be[i]
        for k in range(top_k):
            sel = (topk_idx[..., k] == i).astype(jnp.float32)[..., None]
            out = out + sel * topk_probs[..., k][..., None] * h
    return out.astype(x.dtype)


if __name__ == "__main__":
    B, S, D = 2, 8, 32       # batch, seq, d_model
    E, TOP_K = 4, 2          # num_experts, top_k

    key = jax.random.PRNGKey(0)
    kx, kwg, kbg, kwe, kbe = jax.random.split(key, 5)
    x = jax.random.normal(kx, (B, S, D), dtype=jnp.float32)
    wg = jax.random.normal(kwg, (D, E), dtype=jnp.float32) * 0.1
    bg = jax.random.normal(kbg, (E,), dtype=jnp.float32) * 0.1
    we = jax.random.normal(kwe, (E, D, D), dtype=jnp.float32) * 0.1
    be = jax.random.normal(kbe, (E, D), dtype=jnp.float32) * 0.1

    # small tiles here purely to exercise multi-tile grouped routing at toy shapes;
    # production defaults are token_tile=256..1024, tile_n=256..512 (see header notes).
    out = moe_forward(x, wg, bg, we, be, TOP_K, token_tile=8, tile_n=128)
    out = jax.block_until_ready(out)

    ref = moe_reference(x, wg, bg, we, be, TOP_K)
    assert out.shape == (B, S, D)
    assert jnp.allclose(out, ref, atol=1e-4, rtol=1e-4), "mismatch vs reference"
    print("KERNEL_OK")
</pallas_src>

<mosaic_0001>
module attributes {stable_mosaic.version = 11 : i64} {
  func.func @_grouped_expert_kernel(%arg0: i32, %arg1: i32, %arg2: memref<8xi32, #tpu.memory_space<smem>>, %arg3: memref<8x128xf32, #tpu.memory_space<vmem>>, %arg4: memref<1x128x128xf32, #tpu.memory_space<vmem>>, %arg5: memref<1x1x128xf32, #tpu.memory_space<vmem>>, %arg6: memref<8x128xf32, #tpu.memory_space<vmem>>) attributes {dimension_semantics = [#tpu.dimension_semantics<parallel>, #tpu.dimension_semantics<arbitrary>], iteration_bounds = array<i64: 8, 1>, scalar_prefetch = 1 : i64, scratch_operands = 0 : i64, tpu.core_type = #tpu.core_type<tc>, window_params = [{transform_indices = @transform_0, window_bounds = array<i64: 8, 128>}, {transform_indices = @transform_1, window_bounds = array<i64: 1, 128, 128>}, {transform_indices = @transform_2, window_bounds = array<i64: 1, 1, 128>}, {transform_indices = @transform_3, window_bounds = array<i64: 8, 128>}]} {
    %c0 = arith.constant 0 : index
    %c0_0 = arith.constant 0 : index
    %0 = vector.load %arg3[%c0, %c0_0] : memref<8x128xf32, #tpu.memory_space<vmem>>, vector<8x128xf32>
    %c0_1 = arith.constant 0 : index
    %c0_2 = arith.constant 0 : index
    %c0_3 = arith.constant 0 : index
    %1 = vector.load %arg4[%c0_1, %c0_2, %c0_3] : memref<1x128x128xf32, #tpu.memory_space<vmem>>, vector<1x128x128xf32>
    %2 = vector.shape_cast %1 : vector<1x128x128xf32> to vector<128x128xf32>
    %cst = arith.constant dense<0.000000e+00> : vector<8x128xf32>
    %3 = tpu.matmul %0, %2, %cst {dimension_numbers = #tpu.dot_dimension_numbers<[1], [0], [0], [1], [0, 0, 1, 1], [], []>} : vector<8x128xf32>, vector<128x128xf32>, vector<8x128xf32> -> vector<8x128xf32>
    %c0_4 = arith.constant 0 : index
    %c0_5 = arith.constant 0 : index
    %c0_6 = arith.constant 0 : index
    %4 = vector.load %arg5[%c0_4, %c0_5, %c0_6] : memref<1x1x128xf32, #tpu.memory_space<vmem>>, vector<1x1x128xf32>
    %5 = vector.shape_cast %4 : vector<1x1x128xf32> to vector<1x128xf32>
    %6 = vector.broadcast %5 : vector<1x128xf32> to vector<8x128xf32>
    %7 = arith.addf %3, %6 : vector<8x128xf32>
    %c0_7 = arith.constant 0 : index
    %c0_8 = arith.constant 0 : index
    %8 = vector.load %arg6[%c0_7, %c0_8] : memref<8x128xf32, #tpu.memory_space<vmem>>, vector<8x128xf32>
    tpu.vector_store %arg6[%c0_7, %c0_8], %7 {strides = array<i32>} : memref<8x128xf32, #tpu.memory_space<vmem>>, vector<8x128xf32>,
    return
  }
  func.func @transform_0(%arg0: i32, %arg1: i32, %arg2: memref<8xi32, #tpu.memory_space<smem>>) -> (i32, i32) {
    %c0_i32 = arith.constant 0 : i32
    %c0_i32_0 = arith.constant 0 : i32
    return %arg0, %c0_i32 : i32, i32
  }
  func.func @transform_1(%arg0: i32, %arg1: i32, %arg2: memref<8xi32, #tpu.memory_space<smem>>) -> (i32, i32, i32) {
    %0 = arith.index_cast %arg0 : i32 to index
    %1 = memref.load %arg2[%0] : memref<8xi32, #tpu.memory_space<smem>>
    %c0_i32 = arith.constant 0 : i32
    %c0_i32_0 = arith.constant 0 : i32
    return %1, %c0_i32, %arg1 : i32, i32, i32
  }
  func.func @transform_2(%arg0: i32, %arg1: i32, %arg2: memref<8xi32, #tpu.memory_space<smem>>) -> (i32, i32, i32) {
    %0 = arith.index_cast %arg0 : i32 to index
    %1 = memref.load %arg2[%0] : memref<8xi32, #tpu.memory_space<smem>>
    %c0_i32 = arith.constant 0 : i32
    %c0_i32_0 = arith.constant 0 : i32
    return %1, %c0_i32, %arg1 : i32, i32, i32
  }
  func.func @transform_3(%arg0: i32, %arg1: i32, %arg2: memref<8xi32, #tpu.memory_space<smem>>) -> (i32, i32) {
    %c0_i32 = arith.constant 0 : i32
    return %arg0, %arg1 : i32, i32
  }
}

</mosaic_0001>

<bundles_post_ra>
// kernel: tpu_custom_call.1
= control target key start
LH: loop header
LB: loop body
LE: loop exit
PB: predicated region body
PF: predicated region fallthrough
CT: control target
= control target key end

     0   :  { %s873_s18 = smov [#allocation3]   ;;  %s1240_s0 = inlined_call_operand.hbm [shape: s32[8], index: 0, kind: input, shape index: {}]   ;;  %s1241_s1 = inlined_call_operand.hbm [shape: f32[64,128], index: 1, kind: input, shape index: {}]   ;;  %s1242_s2 = inlined_call_operand.hbm [shape: f32[4,128,128], index: 2, kind: input, shape index: {}]   ;;  %s1243_s3 = inlined_call_operand.hbm [shape: f32[4,1,128], index: 3, kind: input, shape index: {}]   ;;  %s1244_s4 = inlined_call_operand.hbm [shape: f32[64,128], index: 4, kind: output, shape index: {}]  }
   0x1   :  { %1251 = sst [smem:[#allocation28_spill]] %s1241_s1  ;;  %s10_s17 = sshll.u32 %s1240_s0, 4  ;;  %s11_s17 = int_to_ptr.hbm [resolvable:$true] %s10_s17 }
   0x2   :  { %1252 = sst [smem:[#allocation29_spill]] %s1242_s2 }
   0x3   :  { %1253 = sst [smem:[#allocation30_spill]] %s1244_s4 }
   0x4   :  { %13 = dma.hbm_to_smem %s11_s17, 16, %s873_s18, [#allocation2] }
   0x5   :  { %807 = dma.done.wait [#allocation2], 16 }
   0x6   :  { %808 = vsyncadd [#allocation2], 4294967280 }
   0x7   :  { %16 = sfence }
   0x8   :  { %17 = vsyncpa [#allocation5], 0 }
   0x9   :  { %19 = vsyncpa [#allocation5 + $0x1], 0 }
   0xa   :  { %20 = vsyncpa [#allocation8], 0 }
   0xb   :  { %22 = vsyncpa [#allocation8 + $0x1], 0 }
   0xc   :  { %23 = vsyncpa [#allocation6], 0 }
   0xd   :  { %25 = vsyncpa [#allocation6 + $0x1], 0  ;;  %s904_s19 = smov 0   ;;  %s906_s20 = smov 0  }
   0xe   :  { %s908_s21 = smov 0   ;;  %s910_s22 = smov 0  }
   0xf   :  { %s912_s0 = smov 0   ;;  %s914_s23 = smov 0  }
  0x10   :  { %s916_s24 = smov 0   ;;  %s918_s25 = smov 0  }
  0x11   :  { %s920_s26 = smov 0   ;;  %s922_s27 = smov 0  }
  0x12   :  { %s924_s28 = smov 0   ;;  %s926_s29 = smov 0  }
  0x13 LB: > { %1254 = sst [smem:[#allocation20_spill]] %s847_s23  ;;  %s43_s30 = sadd.s32 1, %s867_s28  ;;  %s871_s29 = sphi %s926_s29, %s31_s29   ;;  %s867_s28 = sphi %s924_s28, %s1285_s28   ;;  %s863_s27 = sphi %s922_s27, %s1284_s27   ;;  %s859_s26 = sphi %s920_s26, %s1283_s26   ;;  %s855_s25 = sphi %s918_s25, %s1292_s25   ;;  %s851_s24 = sphi %s916_s24, %s1291_s24   ;;  %s847_s23 = sphi %s914_s23, %s1281_s23   ;;  %s843_s0 = sphi %s912_s0, %s1290_s0   ;;  %s839_s22 = sphi %s910_s22, %s1289_s22   ;;  %s835_s21 = sphi %s908_s21, %s1288_s21   ;;  %s831_s20 = sphi %s906_s20, %s1287_s20   ;;  %s827_s19 = sphi %s904_s19, %s1286_s19  }
  0x14   : > { %1255 = sst [smem:[#allocation21_spill]] %s859_s26  ;;  %p58_p0 = scmp.eq.s32.totalorder %s871_s29, 0 }
  0x15   : > { %1256 = sst [smem:[#allocation22_spill]] %s867_s28  ;;  %p45_p1 = scmp.ge.s32.totalorder %s43_s30, 8 }
  0x16   : > { %s73_s5 = sld [smem:[#allocation3 + %s867_s28]]  ;;  %s80_s6 = sadd.s32 1, %s847_s23 }
  0x17   : > { %p87_p2 = scmp.ne.s32.totalorder %s847_s23, %s843_s0  ;;  %s1294_s30 = smov (%p45_p1, %s43_s30), 0 }
  0x18   : > { %1257 = sst [smem:[#allocation23_spill]] %s1294_s30  ;;  %p93_p4 = scmp.ne.s32.totalorder %s843_s0, %s839_s22 }
  0x19   : > { %p974_p3 = por %p87_p2, %p58_p0  ;;  %s74_s8 = sld [smem:[#allocation3 + %s1294_s30]] }
  0x1a   : > { %p527_p5 = scmp.lt.s32.totalorder %s871_s29, 8  ;;  %s194_s9 = sand.u32 1, %s871_s29  }
  0x1b   : > { %s196_s10 = sand.u32 1, %s847_s23   ;;  %p488_p8 = scmp.ge.s32.totalorder %s871_s29, 1 }
  0x1c   : > { %s485_s11 = sshll.u32 %s196_s10, 7  ;;  %p988_p6 = pnand %p527_p5, %p974_p3 }
  0x1d   : > { %s498_s13 = scalar_select %p974_p3, [#allocation3], [#allocation11] }
  0x1e   : > { %s198_s15 = scalar_lea.vmem [#allocation7], %s485_s11  ;;  %p235_p9 = scmp.lt.s32.totalorder %s871_s29, 9 }
  0x1f   : > { %s75_s14 = ssub.s32 %s73_s5, %s74_s8  ;;  %s994_s16 = sshll.u32 %s198_s15, 4 }
  0x20   : > { %1260 = sst [smem:[#allocation24_spill]] %s994_s16  ;;  %p78_p7 = scmp.eq.s32.totalorder %s75_s14, 0 }
  0x21   : > { %s499_s17 = scalar_select %p974_p3, %s867_s28, 0 }
  0x22   : > { %s1001_s18 = scalar_select %p78_p7, %s847_s23, %s80_s6  }
  0x23   : > { %s1296_s13 = smov (!%p527_p5, %s498_s13), [#allocation13]  ;;  %s1298_s17 = smov (!%p527_p5, %s499_s17), 0 }
  0x24   : > { %1261 = sst [smem:[#allocation25_spill]] %s1001_s18  ;;  %p1009_p10 = pnand %p488_p8, %p235_p9 }
  0x25   : > { %s199_s10 = sld [smem:[%s1296_s13 + %s1298_s17]]  ;;  %s1014_s11 = sadd.s32 4294967295, %s871_s29  }
  0x26   : > { %s1263_s2 = sld [smem:[#allocation29_spill]]  ;;  %s480_s15 = sadd.s32 4294967294, %s871_s29  }
  0x27   : > { %s47_s18 = ssub.s32 %s867_s28, %s1294_s30  ;;  %s1026_s17 = scalar_lea.sflag [#allocation8], %s194_s9 }
  0x28   : > { %p1022_p11 = scmp.eq.s32.totalorder %s47_s18, 0  ;;  %p645_p13 = pneg %p988_p6 }
  0x2b   : > { %s496_s8 = sshll.u32 %s199_s10, 7 }
  0x2c   : > { %s205_s6 = scalar_lea.hbm %s1263_s2, %s496_s8  ;;  %s648_s14 = scalar_lea.hbm %s1263_s2, 512 }
  0x2d   : > { %s206_s16 = sshll.u32 %s205_s6, 4  ;;  %s207_s16 = int_to_ptr.hbm [resolvable:$true] %s206_s16 }
  0x2e   : > { %s641_s23 = sshra.s32 %s207_s16, 4  ;;  %s642_s23 = int_to_ptr.hbm [resolvable:$true] %s641_s23 }
  0x2f   : > { %s643_s4 = scalar_lea.hbm %s642_s23, 128  ;;  %p649_p3 = scmp.lt.s32.totalorder %s642_s23, %s1263_s2 }
  0x30   : > { %p644_p12 = scmp.ne.s32.totalorder %s642_s23, %s643_s4  ;;  %p650_p7 = scmp.lt.s32.totalorder %s648_s14, %s643_s4 }
  0x32   : > { %p646_p1 = pnand %p645_p13, %p644_p12  ;;  %p651_p8 = por %p650_p7, %p649_p3 }
  0x34   : > { %p647_p2 = pneg %p646_p1 }
  0x36   : > { %p652_p9 = pnand %p651_p8, %p647_p2 }
  0x38   : > { %655 = shalt.err (!%p652_p9)
}
  0x39   : > { %s874_s9 = smov 128   ;;  %s1265_s18 = sld [smem:[#allocation24_spill]] }
  0x3a   : > { %s875_s4 = smov 8   ;;  %s50_s10 = sadd.s32 1, %s859_s26 }
  0x3b   : > { %p57_p12 = scmp.ne.s32.totalorder %s859_s26, %s855_s25  ;;  %p63_p1 = scmp.ne.s32.totalorder %s855_s25, %s851_s24 }
  0x3c   : > { %s1047_s8 = scalar_select %p1022_p11, %s859_s26, %s50_s10  }
  0x3d   : > { %p1051_p13 = por %p58_p0, %p57_p12  ;;  %p64_p2 = scmp.eq.s32.totalorder %s1014_s11, 0 }
  0x3e   : > { %1267 = sst [smem:[#allocation26_spill]] %s1047_s8  ;;  %p149_p3 = scmp.eq.s32.totalorder %s1014_s11, 7 }
  0x3f   : > { %s1266_s23 = int_to_ptr.vmem [resolvable:$true] %s1265_s18  ;;  %p155_p7 = scmp.eq.s32.totalorder %s480_s15, 7 }
  0x40   : > { %517 = dma.hbm_to_vmem [thread:$0]  (!%p988_p6), %s207_s16, 2048, %s1266_s23, %s1026_s17, %s874_s9, %s874_s9, %s875_s4  }
  0x41   : > { %s175_s12 = sand.u32 1, %s859_s26   ;;  %p1062_p6 = por %p64_p2, %p63_p1 }
  0x42   : > { %p1071_p11 = por %p93_p4, %p64_p2  ;;  %p1075_p8 = por %p149_p3, %p57_p12 }
  0x43   : > { %p1079_p9 = por %p155_p7, %p63_p1  ;;  %s483_s6 = sshll.u32 %s175_s12, 3 }
  0x44   : > { %s484_s22 = sshll.u32 %s867_s28, 3  ;;  %s1273_s1 = sld [smem:[#allocation28_spill]] }
  0x45   : > { %s1272_s15 = scalar_select %p1079_p9, 1, 0 }
  0x46   : > { %s179_s23 = scalar_lea.vmem [#allocation4], %s483_s6  ;;  %p510_p4 = pnand %p527_p5, %p1051_p13 }
  0x47   : > { %s187_s10 = sshll.u32 %s179_s23, 4  ;;  %s176_s8 = scalar_lea.sflag [#allocation5], %s175_s12  ;;  %s188_s10 = int_to_ptr.vmem [resolvable:$true] %s187_s10 }
  0x48   : > { %s103_s26 = sld [smem:[#allocation3 + %s867_s28]]  ;;  %p117_p12 = scmp.ne.s32.totalorder %s835_s21, %s831_s20 }
  0x49   : > { %s104_s9 = sld [smem:[#allocation3 + %s1294_s30]]  ;;  %p123_p1 = scmp.ne.s32.totalorder %s831_s20, %s827_s19 }
  0x4a   : > { %s183_s4 = scalar_lea.hbm %s1273_s1, %s484_s22  ;;  %p119_p3 = por %p117_p12, %p58_p0 }
  0x4b   : > { %s185_s2 = sshll.u32 %s183_s4, 4  ;;  %p1101_p7 = por %p123_p1, %p64_p2  ;;  %s186_s2 = int_to_ptr.hbm [resolvable:$true] %s185_s2 }
  0x4c   : > { %512 = dma.hbm_to_vmem [thread:$0]  (!%p510_p4), %s186_s2, 128, %s188_s10, %s176_s8  }
  0x4d   : > { %s501_s14 = scalar_select %p119_p3, [#allocation3], [#allocation12] }
  0x4e   : > { %s110_s18 = sadd.s32 1, %s835_s21  ;;  %s220_s4 = sand.u32 1, %s835_s21  }
  0x4f   : > { %s105_s22 = ssub.s32 %s103_s26, %s104_s9  ;;  %s1300_s14 = smov (!%p527_p5, %s501_s14), [#allocation14] }
  0x50   : > { %p108_p13 = scmp.eq.s32.totalorder %s105_s22, 0  ;;  %p1117_p4 = pnand %p527_p5, %p119_p3 }
  0x51   : > { %s502_s12 = scalar_select %p119_p3, %s867_s28, 0 }
  0x52   : > { %s1109_s23 = scalar_select %p108_p13, %s835_s21, %s110_s18  }
  0x53   : > { %s1302_s12 = smov (!%p527_p5, %s502_s12), 0  ;;  %s221_s8 = scalar_lea.vmem [#allocation9], %s220_s4 }
  0x54   : > { %1275 = sst [smem:[#allocation27_spill]] %s1109_s23  ;;  %s230_s10 = sshll.u32 %s221_s8, 4  ;;  %s231_s10 = int_to_ptr.vmem [resolvable:$true] %s230_s10 }
  0x55   : > { %s222_s19 = sld [smem:[%s1300_s14 + %s1302_s12]]  ;;  %p705_p5 = pneg %p1117_p4 }
  0x56   : > { %s708_s14 = scalar_lea.hbm %s1243_s3, 4 }
  0x5b   : > { %s226_s22 = scalar_lea.hbm %s1243_s3, %s222_s19 }
  0x5c   : > { %s228_s18 = sshll.u32 %s226_s22, 4  ;;  %s229_s18 = int_to_ptr.hbm [resolvable:$true] %s228_s18 }
  0x5d   : > { %s701_s1 = sshra.s32 %s229_s18, 4  ;;  %s702_s1 = int_to_ptr.hbm [resolvable:$true] %s701_s1 }
  0x5e   : > { %s703_s30 = scalar_lea.hbm %s702_s1, 1  ;;  %p709_p1 = scmp.lt.s32.totalorder %s702_s1, %s1243_s3 }
  0x5f   : > { %p704_p0 = scmp.ne.s32.totalorder %s702_s1, %s703_s30  ;;  %p710_p3 = scmp.lt.s32.totalorder %s708_s14, %s703_s30 }
  0x61   : > { %p706_p2 = pnand %p705_p5, %p704_p0  ;;  %p711_p13 = por %p710_p3, %p709_p1 }
  0x63   : > { %p707_p12 = pneg %p706_p2 }
  0x65   : > { %p712_p9 = pnand %p711_p13, %p707_p12 }
  0x67   : > { %715 = shalt.err (!%p712_p9)
}
  0x68   : > { %522 = dma.hbm_to_vmem [thread:$0]  (!%p1117_p4), %s229_s18, 16, %s231_s10, %s1026_s17  }
  0x69   : > { %239 = sbr.rel (%p1009_p10) target bundleno = 281 (0x119), region = 32  ;;  %s1138_s19 = sand.u32 (!%p1009_p10), 1, %s855_s25  }
  0x6a   : > { %s489_s28 = sshll.u32 (!%p1009_p10), %s1138_s19, 3  ;;  %s242_s1 = scalar_lea.sflag (!%p1009_p10), [#allocation5], %s1138_s19 }
  0x6b   : > { %s1144_s30 = scalar_lea.vmem (!%p1009_p10), [#allocation4], %s489_s28 }
  0x6e   : > { %810 = dma.done.wait (%p1062_p6), %s242_s1, 128  }
  0x6f   : > { %812 = vsyncadd (%p1062_p6), %s242_s1, 4294967168  ;;  %s251_s5 = sand.u32 1, %s1014_s11   ;;  %s253_s17 = sand.u32 1, %s843_s0  }
  0x70   : > { %s490_s23 = sshll.u32 %s253_s17, 7  ;;  %s252_s2 = scalar_lea.sflag [#allocation8], %s251_s5 }
  0x71   : > { %s1152_s8 = scalar_lea.vmem [#allocation7], %s490_s23 }
  0x72   : > { %814 = dma.done.wait (%p1071_p11), %s252_s2, 2048  }
  0x73   : > { %816 = vsyncadd (%p1071_p11), %s252_s2, 4294965248  ;;  %s263_s10 = sand.u32 1, %s831_s20  }
  0x74   : > { %s1159_s26 = scalar_lea.vmem [#allocation9], %s263_s10 }
  0x75   : > { %818 = dma.done.wait (%p1101_p7), %s252_s2, 16  }
  0x76   : > { %820 = vsyncadd (%p1101_p7), %s252_s2, 4294967280  ;;  %v315_v0 = vld [vmem:[%s1152_s8 + $0x78] sm:$0xff]  ;;  %v314_v1 = vld [vmem:[%s1152_s8 + $0x70] sm:$0xff]  ;;  %s493_s11 = sshll.u32 %s863_s27, 3  ;;  %s1277_s6 = sld [smem:[#allocation30_spill]] }
  0x77   : > { %320 = vmatpush.msra.mxu0 %v315_v0  ;;  %v313_v2 = vld [vmem:[%s1152_s8 + $0x68] sm:$0xff]  ;;  %v312_v3 = vld [vmem:[%s1152_s8 + $0x60] sm:$0xff]  ;;  %v311_v4 = vld [vmem:[%s1152_s8 + $0x58] sm:$0xff]  ;;  %s296_s22 = scalar_lea.vmem [#allocation10], %s489_s28  ;;  %s342_s4 = scalar_lea.sflag [#allocation6], %s1138_s19 }
  0x78   : > { %v310_v5 = vld [vmem:[%s1152_s8 + $0x50] sm:$0xff]  ;;  %v309_v6 = vld [vmem:[%s1152_s8 + $0x48] sm:$0xff]  ;;  %v308_v7 = vld [vmem:[%s1152_s8 + $0x40] sm:$0xff]  ;;  %s355_s18 = sshll.u32 %s296_s22, 4  ;;  %s356_s18 = int_to_ptr.vmem [resolvable:$true] %s355_s18 }
  0x79   : > { %321 = vmatpush.msra.mxu0 %v314_v1  ;;  %v307_v8 = vld [vmem:[%s1152_s8 + $0x38] sm:$0xff]  ;;  %v306_v9 = vld [vmem:[%s1152_s8 + $0x30] sm:$0xff]  ;;  %v305_v10 = vld [vmem:[%s1152_s8 + $0x28] sm:$0xff] }
  0x7a   : > { %v304_v11 = vld [vmem:[%s1152_s8 + $0x20] sm:$0xff]  ;;  %v303_v12 = vld [vmem:[%s1152_s8 + $0x18] sm:$0xff]  ;;  %v302_v13 = vld [vmem:[%s1152_s8 + $0x10] sm:$0xff] }
  0x7b   : > { %322 = vmatpush.msra.mxu0 %v313_v2  ;;  %v301_v14 = vld [vmem:[%s1152_s8 + $0x8] sm:$0xff]  ;;  %v300_v15 = vld [vmem:[%s1152_s8] sm:$0xff]  ;;  %v299_v16 = vld [vmem:[%s1144_s30] sm:$0xff] }
  0x7c   : > { %s353_s9 = scalar_lea.hbm %s1277_s6, %s493_s11  ;;  %v628_v17 = vld [vmem:[%s1159_s26] ss:$0 sm:$0xff]  ;;  %s751_s5 = scalar_lea.hbm %s1277_s6, 64 }
  0x7d   : > { %323 = vmatpush.msra.mxu0 %v312_v3  ;;  %s357_s14 = sshll.u32 %s353_s9, 4  ;;  %s358_s14 = int_to_ptr.hbm [resolvable:$true] %s357_s14 }
  0x7e   : > { %s745_s12 = sshra.s32 %s358_s14, 4  ;;  %s746_s12 = int_to_ptr.hbm [resolvable:$true] %s745_s12 }
  0x7f   : > { %324 = vmatpush.msra.mxu0 %v311_v4  ;;  %s747_s1 = scalar_lea.hbm %s746_s12, 8  ;;  %p752_p9 = scmp.lt.s32.totalorder %s746_s12, %s1277_s6 }
  0x80   : > { %p748_p10 = scmp.ne.s32.totalorder %s746_s12, %s747_s1  ;;  %p753_p7 = scmp.lt.s32.totalorder %s751_s5, %s747_s1 }
  0x81   : > { %325 = vmatpush.msra.mxu0 %v310_v5 }
  0x82   : > { %p749_p6 = pnand %p748_p10, %p1075_p8  ;;  %p754_p4 = por %p753_p7, %p752_p9 }
  0x83   : > { %326 = vmatpush.msra.mxu0 %v309_v6 }
  0x84   : > { %p750_p11 = pneg %p749_p6 }
  0x85   : > { %327 = vmatpush.msra.mxu0 %v308_v7 }
  0x86   : > { %p755_p0 = pnand %p754_p4, %p750_p11 }
  0x87   : > { %328 = vmatpush.msra.mxu0 %v307_v8 }
  0x89   : > { %329 = vmatpush.msra.mxu0 %v306_v9 }
  0x8b   : > { %330 = vmatpush.msra.mxu0 %v305_v10 }
  0x8d   : > { %331 = vmatpush.msra.mxu0 %v304_v11 }
  0x8f   : > { %332 = vmatpush.msra.mxu0 %v303_v12 }
  0x91   : > { %333 = vmatpush.msra.mxu0 %v302_v13 }
  0x93   : > { %334 = vmatpush.msra.mxu0 %v301_v14 }
  0x95   : > { %335 = vmatpush.msra.mxu0 %v300_v15 }
  0x96   : > { %336 = vmatmul.f32.vlgmr.msra.gmra.mxu0 %v299_v16 }
 0x113   : > { %v337_v18 = vpop.f32.mrf.mxu0 }
 0x114   : > { %v338_v19 = vadd.f32 %v628_v17, %v337_v18 }
 0x116   : > { %340 = vst [vmem:[%s296_s22] sm:$0xff] %v338_v19 }
 0x117   : > { %758 = shalt.err (!%p755_p0)
}
 0x118   : > { %507 = dma.vmem_to_hbm [thread:$0]  (%p1075_p8), %s356_s18, 128, %s358_s14, %s342_s4  }
 0x119 PF: > { %p528_p5 = scmp.ge.s32.totalorder %s871_s29, 2  ;;  %s369_s19 = sand.u32 1, %s851_s24  }
 0x11a   : > { %p1278_p2 = scmp.ne.s32.totalorder %s1272_s15, 0  ;;  %s370_s23 = scalar_lea.sflag [#allocation6], %s369_s19 }
 0x11c   : > { %p524_p12 = pnand %p528_p5, %p1278_p2 }
 0x11e   : > { %p525_p1 = pneg %p524_p12 }
 0x120   : > { %822 = dma.done.wait (%p525_p1), %s370_s23, 128  }
 0x121   : > { %824 = vsyncadd (%p525_p1), %s370_s23, 4294967168  ;;  %s31_s29 = sadd.s32 1, %s871_s29   ;;  %s1279_s2 = sld [smem:[#allocation27_spill]] }
 0x122   : > { %p28_p3 = scmp.ge.s32.totalorder %s31_s29, 10   ;;  %s1280_s7 = sld [smem:[#allocation20_spill]] }
 0x123   : > { %s1281_s23 = sld [smem:[#allocation25_spill]]  ;;  %s1286_s19 = smov %s831_s20 }
 0x124   : > { %s1282_s8 = sld [smem:[#allocation21_spill]]  ;;  %s1287_s20 = smov %s835_s21 }
 0x125   : > { %s1283_s26 = sld [smem:[#allocation26_spill]]  ;;  %s1289_s22 = smov %s843_s0 }
 0x126   : > { %s1284_s27 = sld [smem:[#allocation22_spill]]  ;;  %s1291_s24 = smov %s855_s25 }
 0x127   : > { %s1285_s28 = sld [smem:[#allocation23_spill]]  ;;  %s1288_s21 = smov %s1279_s2 }
 0x128   : > { %s1290_s0 = smov %s1280_s7  ;;  %30 = sbr.rel (!%p28_p3) target bundleno = 19 (0x13), region = 101 }
 0x12a   : > { %s1292_s25 = smov %s1282_s8 }
 0x12d   :  { %376 = vsyncpa [#allocation5], 1 }
 0x12e   :  { %378 = vsyncpa [#allocation5 + $0x1], 1 }
 0x12f   :  { %379 = vsyncpa [#allocation8], 1 }
 0x130   :  { %381 = vsyncpa [#allocation8 + $0x1], 1 }
 0x131   :  { %382 = vsyncpa [#allocation6], 1 }
 0x132   :  { %384 = vsyncpa [#allocation6 + $0x1], 1 }

</bundles_post_ra>
